<compile_context>
chip_gen: v7x
topology: tpu7x:2x2x1
jax: 0.10.0
libtpu: 0.0.40
codegen_flags: <defaults>
</compile_context>

<pallas_src>
import functools

import jax
import jax.numpy as jnp
from jax import lax
from jax.experimental import pallas as pl
from jax.experimental.pallas import tpu as pltpu

NUM_LABELS = 51
EPS = 1e-6

# Class-frequency distribution from the module __init__ (deterministic).
DIST = [118037, 118037, 69007, 48582, 32770, 24470, 20759, 13047, 12215,
        11482, 8411, 5355, 4939, 4732, 4507, 3808, 2496, 2109, 1705, 1586,
        1322, 1277, 1116, 1026, 907, 807, 779, 702, 679, 652, 641, 580, 512,
        511, 493, 485, 435, 369, 343, 327, 289, 265, 263, 224, 198, 172, 153,
        134, 128, 49, 5]


def build_seesaw_matrix(p: float = 0.8) -> jnp.ndarray:
    """Deterministic parameter setup mirroring SeesawLoss.__init__."""
    cc = jnp.asarray(DIST, dtype=jnp.float32)
    conditions = cc[:, None] > cc[None, :]
    trues = (cc[None, :] / cc[:, None]) ** p
    falses = jnp.ones((NUM_LABELS, NUM_LABELS), dtype=jnp.float32)
    return jnp.where(conditions, trues, falses)


def _seesaw_kernel(targets_ref, logits_ref, s_ref, out_ref, *, inv_batch):
    """One batch tile.

    targets_ref: [TILE_B, 1] int32  (-1 => padded row, contributes 0)
    logits_ref : [TILE_B, C]  f32   (raw class dim, no lane padding from HBM)
    s_ref      : [C, C]       f32   (VMEM-resident across the whole grid)
    out_ref    : [1, 1]       f32   scalar accumulator in SMEM
    """
    step = pl.program_id(0)

    @pl.when(step == 0)
    def _init():
        out_ref[0, 0] = jnp.float32(0.0)

    logits = logits_ref[...]                    # [TILE_B, C]
    tgt = targets_ref[...]                      # [TILE_B, 1] int32

    # In-kernel one-hot / row-validity mask (cheap VPU iota + compare).
    col = lax.broadcasted_iota(jnp.int32, logits.shape, 1)
    onehot = (col == tgt).astype(jnp.float32)   # all-zero for padded rows
    valid = (tgt >= 0).astype(jnp.float32)      # [TILE_B, 1]

    # Numerically stable exp(logits - rowmax).
    m = jnp.max(logits, axis=-1, keepdims=True)
    e = jnp.exp(logits - m)                     # [TILE_B, C]

    # Loss only needs sigma at the target class:
    #   e_t   = e[b, t_b]
    #   den_t = sum_j (1 - onehot_j) * s[t_b, j] * e_j + e_t
    #         = sum_j s[t_b, j] * e_j                      (diag(s) == 1)
    e_t = jnp.sum(onehot * e, axis=-1, keepdims=True)                # [TILE_B, 1]
    s_row = jnp.dot(onehot, s_ref[...],
                    preferred_element_type=jnp.float32)              # [TILE_B, C]
    den_t = jnp.sum(s_row * e, axis=-1, keepdims=True)               # [TILE_B, 1]

    sigma_t = e_t / (den_t + EPS)
    per_row = -jnp.log(sigma_t + EPS) * valid                        # [TILE_B, 1]

    out_ref[0, 0] += jnp.sum(per_row) * inv_batch


def _round_up(x: int, m: int) -> int:
    return ((x + m - 1) // m) * m


def seesaw_loss(logits: jnp.ndarray, targets: jnp.ndarray,
                s: jnp.ndarray, *, tile_b: int = 1024) -> jnp.ndarray:
    """logits: [B, NUM_LABELS] float, targets: [B] int -> scalar mean loss."""
    B, C = logits.shape
    assert C == NUM_LABELS

    logits = logits.astype(jnp.float32)
    targets = targets.astype(jnp.int32)
    s = s.astype(jnp.float32)

    # Batch tile: >= 512 is ideal on real workloads (HBM roofline), but clamp
    # to the (8-aligned) batch for small inputs.  VMEM use per tile is tiny
    # (~0.5 MiB double-buffered at tile_b=1024), safe on v5e/v6e/v7x limits.
    tile_b = max(8, min(_round_up(tile_b, 8), _round_up(B, 8)))
    num_tiles = pl.cdiv(B, tile_b)
    b_pad = num_tiles * tile_b

    if b_pad != B:
        # Padded rows get target = -1 -> zero one-hot + zero validity mask,
        # so they contribute exactly 0; divisor below stays the true B.
        logits = jnp.pad(logits, ((0, b_pad - B), (0, 0)))
        targets = jnp.pad(targets, (0, b_pad - B), constant_values=-1)
    targets2d = targets.reshape(b_pad, 1)

    kernel = functools.partial(_seesaw_kernel, inv_batch=1.0 / B)

    out = pl.pallas_call(
        kernel,
        out_shape=jax.ShapeDtypeStruct((1, 1), jnp.float32),
        grid_spec=pl.GridSpec(
            grid=(num_tiles,),
            in_specs=[
                pl.BlockSpec((tile_b, 1), lambda i: (i, 0)),   # targets
                pl.BlockSpec((tile_b, C), lambda i: (i, 0)),   # logits
                pl.BlockSpec((C, C), lambda i: (0, 0)),        # s (resident)
            ],
            out_specs=pl.BlockSpec(memory_space=pltpu.MemorySpace.SMEM),
        ),
        compiler_params=pltpu.CompilerParams(
            dimension_semantics=("arbitrary",)),
    )(targets2d, logits, s)
    # TODO(synk): on v7x, split the batch axis across both TensorCores via
    # per-core partial sums instead of a single serial "arbitrary" reduction.
    return out[0, 0]


def _reference_loss(logits, targets, s):
    """Pure-JAX transcription of the PyTorch forward (for verification)."""
    t = jax.nn.one_hot(targets, NUM_LABELS, dtype=jnp.float32)
    m = logits.max(axis=-1, keepdims=True)
    e = jnp.exp(logits - m)
    den = ((1.0 - t)[:, None, :] * s[None, :, :] * e[:, None, :]).sum(-1) + e
    sigma = e / (den + EPS)
    return (-t * jnp.log(sigma + EPS)).sum(-1).mean()


if __name__ == "__main__":
    key = jax.random.PRNGKey(0)
    k_logits, k_targets = jax.random.split(key)

    B = 10  # deliberately not a multiple of 8 to exercise the padding path
    logits = jax.random.normal(k_logits, (B, NUM_LABELS), dtype=jnp.float32)
    targets = jax.random.randint(k_targets, (B,), 0, NUM_LABELS, dtype=jnp.int32)

    s = build_seesaw_matrix(p=0.8)

    loss = seesaw_loss(logits, targets, s)
    loss = jax.block_until_ready(loss)

    ref = jax.block_until_ready(_reference_loss(logits, targets, s))
    assert jnp.allclose(loss, ref, rtol=1e-4, atol=1e-5), (loss, ref)

    print("KERNEL_OK")
</pallas_src>

<mosaic_0001>
module attributes {stable_mosaic.version = 11 : i64} {
  func.func @_seesaw_kernel(%arg0: i32, %arg1: memref<16x1xi32, #tpu.memory_space<vmem>>, %arg2: memref<16x51xf32, #tpu.memory_space<vmem>>, %arg3: memref<51x51xf32, #tpu.memory_space<vmem>>, %arg4: memref<1x1xf32, #tpu.memory_space<smem>>) attributes {dimension_semantics = [#tpu.dimension_semantics<arbitrary>], iteration_bounds = array<i64: 1>, scalar_prefetch = 0 : i64, scratch_operands = 0 : i64, tpu.core_type = #tpu.core_type<tc>, window_params = [{transform_indices = @transform_0, window_bounds = array<i64: 16, 1>}, {transform_indices = @transform_1, window_bounds = array<i64: 16, 51>}, {pipeline_mode = #tpu.pipeline_mode<synchronous>, transform_indices = @transform_2, window_bounds = array<i64: 51, 51>}, {transform_indices = @transform_3, window_bounds = array<i64: 1, 1>}]} {
    %c0_i32 = arith.constant 0 : i32
    %0 = arith.cmpi eq, %arg0, %c0_i32 : i32
    %1 = arith.extui %0 : i1 to i32
    %c0_i32_0 = arith.constant 0 : i32
    %2 = arith.cmpi ne, %1, %c0_i32_0 : i32
    scf.if %2 {
      %cst_19 = arith.constant 0.000000e+00 : f32
      %c0_20 = arith.constant 0 : index
      %c0_21 = arith.constant 0 : index
      %44 = memref.load %arg4[%c0_20, %c0_21] : memref<1x1xf32, #tpu.memory_space<smem>>
      memref.store %cst_19, %arg4[%c0_20, %c0_21] : memref<1x1xf32, #tpu.memory_space<smem>>
    } else {
    }
    %c0 = arith.constant 0 : index
    %c0_1 = arith.constant 0 : index
    %3 = vector.load %arg2[%c0, %c0_1] : memref<16x51xf32, #tpu.memory_space<vmem>>, vector<16x51xf32>
    %c0_2 = arith.constant 0 : index
    %c0_3 = arith.constant 0 : index
    %4 = vector.load %arg1[%c0_2, %c0_3] : memref<16x1xi32, #tpu.memory_space<vmem>>, vector<16x1xi32>
    %5 = tpu.iota {dimensions = array<i32: 1>} : vector<16x51xi32>
    %6 = vector.broadcast %4 : vector<16x1xi32> to vector<16x51xi32>
    %7 = arith.cmpi eq, %5, %6 : vector<16x51xi32>
    %8 = arith.extui %7 : vector<16x51xi1> to vector<16x51xi32>
    %9 = arith.sitofp %8 : vector<16x51xi32> to vector<16x51xf32>
    %c0_i32_4 = arith.constant 0 : i32
    %10 = vector.broadcast %c0_i32_4 : i32 to vector<16x1xi32>
    %11 = arith.cmpi sge, %4, %10 : vector<16x1xi32>
    %12 = arith.extui %11 : vector<16x1xi1> to vector<16x1xi32>
    %13 = arith.sitofp %12 : vector<16x1xi32> to vector<16x1xf32>
    %cst = arith.constant dense<0xFF800000> : vector<16xf32>
    %14 = vector.multi_reduction <maximumf>, %3, %cst [1] : vector<16x51xf32> to vector<16xf32>
    %15 = vector.shape_cast %14 : vector<16xf32> to vector<16x1xf32>
    %16 = vector.broadcast %15 : vector<16x1xf32> to vector<16x51xf32>
    %17 = arith.subf %3, %16 : vector<16x51xf32>
    %18 = math.exp %17 : vector<16x51xf32>
    %19 = arith.mulf %9, %18 : vector<16x51xf32>
    %cst_5 = arith.constant dense<0.000000e+00> : vector<16xf32>
    %20 = vector.multi_reduction <add>, %19, %cst_5 [1] : vector<16x51xf32> to vector<16xf32>
    %21 = vector.shape_cast %20 : vector<16xf32> to vector<16x1xf32>
    %c0_6 = arith.constant 0 : index
    %c0_7 = arith.constant 0 : index
    %22 = vector.load %arg3[%c0_6, %c0_7] : memref<51x51xf32, #tpu.memory_space<vmem>>, vector<51x51xf32>
    %cst_8 = arith.constant dense<0.000000e+00> : vector<16x51xf32>
    %23 = tpu.matmul %9, %22, %cst_8 {dimension_numbers = #tpu.dot_dimension_numbers<[1], [0], [0], [1], [0, 0, 1, 1], [], []>} : vector<16x51xf32>, vector<51x51xf32>, vector<16x51xf32> -> vector<16x51xf32>
    %24 = arith.mulf %23, %18 : vector<16x51xf32>
    %cst_9 = arith.constant dense<0.000000e+00> : vector<16xf32>
    %25 = vector.multi_reduction <add>, %24, %cst_9 [1] : vector<16x51xf32> to vector<16xf32>
    %26 = vector.shape_cast %25 : vector<16xf32> to vector<16x1xf32>
    %cst_10 = arith.constant 9.99999997E-7 : f32
    %27 = vector.broadcast %cst_10 : f32 to vector<16x1xf32>
    %28 = arith.addf %26, %27 : vector<16x1xf32>
    %29 = arith.divf %21, %28 : vector<16x1xf32>
    %cst_11 = arith.constant 9.99999997E-7 : f32
    %30 = vector.broadcast %cst_11 : f32 to vector<16x1xf32>
    %31 = arith.addf %29, %30 : vector<16x1xf32>
    %32 = math.log %31 : vector<16x1xf32>
    %cst_12 = arith.constant 0.000000e+00 : f32
    %33 = vector.broadcast %cst_12 : f32 to vector<16x1xf32>
    %34 = arith.subf %33, %32 : vector<16x1xf32>
    %35 = arith.mulf %34, %13 : vector<16x1xf32>
    %c0_13 = arith.constant 0 : index
    %c0_14 = arith.constant 0 : index
    %36 = memref.load %arg4[%c0_13, %c0_14] : memref<1x1xf32, #tpu.memory_space<smem>>
    %37 = vector.shape_cast %35 : vector<16x1xf32> to vector<1x16x1xf32>
    %cst_15 = arith.constant dense<0.000000e+00> : vector<1xf32>
    %38 = vector.multi_reduction <add>, %37, %cst_15 [1, 2] : vector<1x16x1xf32> to vector<1xf32>
    %39 = vector.shape_cast %38 : vector<1xf32> to vector<1x1x1xf32>
    %40 = vector.extract %39[0, 0, 0] : f32 from vector<1x1x1xf32>
    %cst_16 = arith.constant 1.000000e-01 : f32
    %41 = arith.mulf %40, %cst_16 : f32
    %42 = arith.addf %36, %41 : f32
    %c0_17 = arith.constant 0 : index
    %c0_18 = arith.constant 0 : index
    %43 = memref.load %arg4[%c0_17, %c0_18] : memref<1x1xf32, #tpu.memory_space<smem>>
    memref.store %42, %arg4[%c0_17, %c0_18] : memref<1x1xf32, #tpu.memory_space<smem>>
    return
  }
  func.func @transform_0(%arg0: i32) -> (i32, i32) {
    %c0_i32 = arith.constant 0 : i32
    %c0_i32_0 = arith.constant 0 : i32
    return %arg0, %c0_i32 : i32, i32
  }
  func.func @transform_1(%arg0: i32) -> (i32, i32) {
    %c0_i32 = arith.constant 0 : i32
    %c0_i32_0 = arith.constant 0 : i32
    return %arg0, %c0_i32 : i32, i32
  }
  func.func @transform_2(%arg0: i32) -> (i32, i32) {
    %c0_i32 = arith.constant 0 : i32
    %c0_i32_0 = arith.constant 0 : i32
    %c0_i32_1 = arith.constant 0 : i32
    return %c0_i32, %c0_i32_0 : i32, i32
  }
  func.func @transform_3(%arg0: i32) -> (i32, i32) {
    %c0_i32 = arith.constant 0 : i32
    %c0_i32_0 = arith.constant 0 : i32
    %c0_i32_1 = arith.constant 0 : i32
    return %c0_i32, %c0_i32_0 : i32, i32
  }
}

</mosaic_0001>

<bundles_post_ra>
// kernel: tpu_custom_call.1
= control target key start
LH: loop header
LB: loop body
LE: loop exit
PB: predicated region body
PF: predicated region fallthrough
CT: control target
= control target key end

     0   :  { %8 = vsyncpa [#allocation3], 0  ;;  %s409_s0 = inlined_call_operand.vmem [shape: s32[16,1], index: 0, kind: input, shape index: {}]   ;;  %s410_s1 = inlined_call_operand.vmem [shape: f32[16,51], index: 1, kind: input, shape index: {}]   ;;  %s411_s2 = inlined_call_operand.hbm [shape: f32[51,51], index: 2, kind: input, shape index: {}]   ;;  %s412_s3 = inlined_call_operand.hbm [shape: f32[1,1], index: 3, kind: output, shape index: {}]  }
   0x1   :  { %9 = vsyncpa [#allocation4], 0  ;;  %s331_s12 = smov [#allocation2]   ;;  %s295_s16 = scalar_lea.hbm %s411_s2, 896 }
   0x2   :  { %s19_s13 = sshll.u32 %s331_s12, 4  ;;  %p296_p0 = scmp.ne.s32.totalorder %s411_s2, %s295_s16  ;;  %s20_s13 = int_to_ptr.vmem [resolvable:$true] %s19_s13 }
   0x3   :  { %p299_p1 = scmp.lt.u32.totalorder %s295_s16, %s411_s2 }
   0x5   :  { %p301_p2 = pnand %p299_p1, %p296_p0 }
   0x7   :  { %304 = shalt.err (!%p301_p2)
}
   0x8   :  { %s305_s21 = scalar_lea.vmem %s20_s13, 896  ;;  %p310_p4 = scmp.lt.s32.totalorder %s20_s13, %s20_s13 }
   0x9   :  { %p306_p3 = scmp.ne.s32.totalorder %s20_s13, %s305_s21  ;;  %p311_p5 = scmp.lt.s32.totalorder %s305_s21, %s305_s21 }
   0xb   :  { %p312_p6 = por %p311_p5, %p310_p4 }
   0xd   :  { %p313_p7 = pnand %p312_p6, %p306_p3 }
   0xf   :  { %316 = shalt.err (!%p313_p7)
}
  0x10   :  { %s332_s22 = smov 128   ;;  %s333_s23 = smov 8  }
  0x11   :  { %25 = dma.hbm_to_vmem [thread:$0]  %s411_s2, 896, %s20_s13, [#allocation3], %s332_s22, %s332_s22, %s333_s23  }
  0x12   :  { %327 = dma.done.wait [#allocation3], 896  }
  0x13   :  { %328 = vsyncadd [#allocation3], 4294966400  ;;  %v334_v0 = vmov 0   ;;  %vm59_vm0 = vcmask 416768   ;;  %v372_v1 = vld [vmem:[%s409_s0] sm:$0xff]  ;;  %v36_v4 = vld [vmem:[%s410_s1 + $0x8] sm:$0xff]  ;;  %v39_v17 = vlaneseq }
  0x14   :  { %282 = vset.pattern.permute.xlu0 %v334_v0  ;;  %v35_v2 = vld [vmem:[%s410_s1] sm:$0xff]  ;;  %v81_v6 = vld [vmem:[#allocation2 + $0x8] sm:$0xff]  ;;  %v82_v9 = vld [vmem:[#allocation2 + $0x10] sm:$0xff]  ;;  %v63_v11 = vsel %vm59_vm0, %v36_v4, -inf  ;;  %vm93_vm1 = vcmask 1042432   ;;  %v335_v20 = vmov 0.0  }
  0x15   :  { %42 = vperm.xlu0 %282, %v372_v1   ;;  %v60_v3 = vsel %vm59_vm0, %v35_v2, -inf  ;;  %v80_v5 = vld [vmem:[#allocation2] sm:$0xff]  ;;  %v385_v7 = vld [vmem:[%s409_s0 + $0x8] sm:$0xff]  ;;  %v83_v10 = vld [vmem:[#allocation2 + $0x18] sm:$0xff]  ;;  %v40_v18 = vand.u32 127, %v39_v17  ;;  %vm53_vm5 = vcmp.ge.s32.totalorder %v372_v1, 0 }
  0x16   :  { %61 = vmax.xlane.f32.xlu1 %v60_v3  ;;  %v261_v8 = vpack.c.bf16 %v81_v6, %v80_v5  ;;  %v265_v12 = vpack.c.bf16 %v83_v10, %v82_v9  ;;  %v84_v13 = vld [vmem:[#allocation2 + $0x20] sm:$0xff]  ;;  %v85_v14 = vld [vmem:[#allocation2 + $0x28] sm:$0xff]  ;;  %v86_v16 = vld [vmem:[#allocation2 + $0x30] sm:$0x7]  ;;  %vm54_vm4 = vcmp.ge.s32.totalorder %v385_v7, 0  ;;  %v230_v59 = vsel %vm53_vm5, 1.0, %v335_v20 }
  0x17   :  { %v269_v15 = vpack.c.bf16 %v85_v14, %v84_v13  ;;  %v231_v57 = vsel %vm54_vm4, 1.0, %v335_v20  ;;  %vm197_vm6 = vcmask 7168   ;;  %s317_s8 = scalar_lea.hbm %s412_s3, 16 }
  0x18   :  { %262 = vmatprep.subr.bf16.mxu0 %v261_v8  ;;  %p318_p8 = scmp.ne.s32.totalorder %s412_s3, %s317_s8  ;;  %p321_p9 = scmp.lt.u32.totalorder %s317_s8, %s412_s3 }
  0x19   :  { %45 = vperm.xlu0 %282, %v385_v7   ;;  %264 = vmatpush3.bf16.msra.mxu0 %v261_v8 }
  0x1a   :  { %64 = vmax.xlane.f32.xlu1 %v63_v11  ;;  %266 = vmatprep.subr.bf16.mxu0 %v265_v12  ;;  %p323_p10 = pnand %p321_p9, %p318_p8 }
  0x1d   :  { %268 = vmatpush3.bf16.msra.mxu0 %v265_v12 }
  0x1e   :  { %270 = vmatprep.subr.bf16.mxu0 %v269_v15 }
  0x21   :  { %272 = vmatpush3.bf16.msra.mxu0 %v269_v15 }
  0x22   :  { %256 = vmatprep.subr.msk.mxu0 %vm93_vm1, %v86_v16 }
  0x25   :  { %257 = vmatpush3.msk.msra.mxu0 %vm93_vm1, %v86_v16 }
  0x94   :  { %v43_v19 = vpop.permute.xlu0 %42 }
  0x95   :  { %vm47_vm2 = vcmp.eq.s32.totalorder %v40_v18, %v43_v19 }
  0x96   :  { %v228_v21 = vsel %vm47_vm2, 1.0, %v335_v20 }
  0x97   :  { %258 = vmatprep.mubr.msk.f32.mxu0 %vm59_vm0, %v228_v21 }
  0x98   :  { %v46_v22 = vpop.permute.xlu0 %45 }
  0x99   :  { %vm48_vm3 = vcmp.eq.s32.totalorder %v40_v18, %v46_v22 }
  0x9a   :  { %v229_v23 = vsel %vm48_vm3, 1.0, %v335_v20 }
  0x9b   :  { %259 = vmatmul.mubr.msk.f32.vlgmr.msra.gmra.mrb[0].mxu0 %vm59_vm0, %v229_v23 }
  0xa3   :  { %v62_v24 = vpop.xlane.xlu1 %61 }
  0xa4   :  { %v66_v26 = vsub.f32 %v35_v2, %v62_v24 }
  0xa6   :  { %v68_v28 = vmul.f32 1.442695, %v66_v26 }
  0xa7   :  { %v65_v25 = vpop.xlane.xlu1 %64 }
  0xa8   :  { %v67_v27 = vsub.f32 %v36_v4, %v65_v25  ;;  %283 = vpow2.f32 %v68_v28 }
  0xaa   :  { %v70_v29 = vmul.f32 1.442695, %v67_v27 }
  0xac   :  { %285 = vpow2.f32 %v70_v29 }
  0xb2   :  { %v284_v30 = vpop.eup %283 }
  0xb3   :  { %v72_v37 = vmul.f32 %v284_v30, %v228_v21 }
  0xb5   :  { %v74_v39 = vsel %vm59_vm0, %v72_v37, 0.0 }
  0xb6   :  { %v286_v31 = vpop.eup %285 }
  0xb7   :  { %v73_v40 = vmul.f32 %v286_v31, %v229_v23 }
  0xb9   :  { %v77_v41 = vsel %vm59_vm0, %v73_v40, 0.0 }
 0x16e   :  { %v260_v32 = vpop.f32.mrb[0].mxu0 }
 0x16f   :  { %v173_v33 = vmul.f32 %v286_v31, %v260_v32  ;;  %v163_v34 = vpop.f32.mrb[1].mxu0 }
 0x170   :  { %v172_v35 = vmul.f32 %v284_v30, %v163_v34 }
 0x171   :  { %v177_v36 = vsel %vm59_vm0, %v173_v33, 0.0 }
 0x172   :  { %178 = vadd.xlane.f32.xlu1 %v177_v36  ;;  %v174_v38 = vsel %vm59_vm0, %v172_v35, 0.0 }
 0x173   :  { %175 = vadd.xlane.f32.xlu0 %v174_v38 }
 0x176   :  { %75 = vadd.xlane.f32.xlu1 %v74_v39 }
 0x17a   :  { %78 = vadd.xlane.f32.xlu1 %v77_v41 }
 0x1ff   :  { %v179_v42 = vpop.xlane.xlu1 %178 }
 0x200   :  { %v181_v43 = vadd.f32 1e-06, %v179_v42  ;;  %v176_v44 = vpop.xlane.xlu0 %175 }
 0x201   :  { %v180_v45 = vadd.f32 1e-06, %v176_v44 }
 0x202   :  { %287 = vrcp.f32 %v181_v43 }
 0x203   :  { %289 = vrcp.f32 %v180_v45  ;;  %v76_v46 = vpop.xlane.xlu1 %75 }
 0x207   :  { %v79_v48 = vpop.xlane.xlu1 %78 }
 0x20c   :  { %v288_v47 = vpop.eup %287 }
 0x20d   :  { %v290_v49 = vpop.eup %289  ;;  %v185_v50 = vmul.f32 %v288_v47, %v79_v48 }
 0x20e   :  { %v183_v51 = vmul.f32 %v290_v49, %v76_v46 }
 0x20f   :  { %v187_v52 = vadd.f32 1e-06, %v185_v50 }
 0x210   :  { %v186_v53 = vadd.f32 1e-06, %v183_v51 }
 0x211   :  { %291 = vlog2.f32 %v187_v52 }
 0x212   :  { %293 = vlog2.f32 %v186_v53 }
 0x21b   :  { %v292_v54 = vpop.eup %291 }
 0x21c   :  { %v294_v55 = vpop.eup %293  ;;  %v191_v56 = vmul.f32 0.6931472, %v292_v54 }
 0x21d   :  { %v189_v58 = vmul.f32 0.6931472, %v294_v55 }
 0x21e   :  { %v193_v60 = vsub.f32 0.0, %v191_v56 }
 0x21f   :  { %v192_v61 = vsub.f32 0.0, %v189_v58 }
 0x220   :  { %v195_v62 = vmul.f32 %v231_v57, %v193_v60 }
 0x221   :  { %v194_v63 = vmul.f32 %v230_v59, %v192_v61 }
 0x222   :  { %v199_v0 = vsel %vm197_vm6, %v195_v62, 0.0 }
 0x223   :  { %v198_v2 = vsel %vm197_vm6, %v194_v63, 0.0 }
 0x224   :  { %v200_v3 = vadd.f32 %v199_v0, %v198_v2 }
 0x226   :  { %201 = vadd.xlane.f32.xlu1 %v200_v3 }
 0x2b3   :  { %v202_v4 = vpop.xlane.xlu1 %201 }
 0x2b4   :  { %v203_v5 = vrot.slane %v202_v4, 4 }
 0x2b6   :  { %v204_v6 = vadd.f32 %v203_v5, %v202_v4 }
 0x2b8   :  { %v205_v7 = vrot.slane %v204_v6, 2 }
 0x2ba   :  { %v206_v8 = vadd.f32 %v205_v7, %v204_v6 }
 0x2bc   :  { %v207_v1 = vrot.slane %v206_v8, 1 }
 0x2be   :  { %v208_v9 = vadd.f32 %v207_v1, %v206_v8 }
 0x2c0   :  { %273 = vpush %v208_v9 }
 0x2f1   :  { %s274_s0 = spop %273 }
 0x2f2   :  { %s210_s1 = smul.f32 0.1, %s274_s0 }
 0x2f4   :  { %213 = sst [smem:[#allocation5]] %s210_s1 }
 0x2f5   :  { %326 = shalt.err (!%p323_p10)
}
 0x2f6   :  { %s336_s13 = smov [#allocation5]  }
 0x2f7   :  { %221 = dma.smem_to_hbm %s336_s13, 16, %s412_s3, [#allocation4]  }
 0x2f8   :  { %329 = dma.done.wait [#allocation4], 16  }
 0x2f9   :  { %330 = vsyncadd [#allocation4], 4294967280 }
 0x2fa   :  { %225 = sfence }
 0x2fb   :  { %226 = vsyncpa [#allocation3], 1 }
 0x2fc   :  { %227 = vsyncpa [#allocation4], 1 }

</bundles_post_ra>
